<compile_context>
chip_gen: v5e
topology: v5e:2x2
jax: 0.10.0
libtpu: 0.0.40
codegen_flags: <defaults>
</compile_context>

<pallas_src>
import functools

import jax
import jax.numpy as jnp
import numpy as np
from jax.experimental import pallas as pl
from jax.experimental.pallas import tpu as pltpu


def _interpolating_kernel(xu_ref, xst_ref, idx_ref, w_ref, *, k, epsilon):
    # xu_ref:  (1, tT, D) unsampled (query) points for this (batch, T-tile)
    # xst_ref: (1, D, N)  sampled points, transposed so N is lane-dense
    xu = xu_ref[0].astype(jnp.float32)      # (tT, D)
    xst = xst_ref[0].astype(jnp.float32)    # (D, N)
    tT, D = xu.shape
    N = xst.shape[1]

    # Direct squared distance: d2[i, j] = sum_d (xu[i, d] - xs[j, d])^2.
    # Unrolled over the tiny D axis -> D broadcast/sub/FMA VPU passes over the
    # lane-dense (tT, N) tile.  Exact (no cancellation), no MXU, no transpose.
    d2 = jnp.zeros((tT, N), jnp.float32)
    for d in range(D):
        diff = xu[:, d:d + 1] - xst[d:d + 1, :]      # (tT, 1) - (1, N) -> (tT, N)
        d2 = d2 + diff * diff

    # Iterative selection of the K smallest squared distances + their indices
    # (== torch.sort(dist, dim=2)[..., :K]; sqrt is monotone so ordering by d2
    # is identical).  Ties resolve to the smallest column index.
    col_ids = jax.lax.broadcasted_iota(jnp.int32, (tT, N), 1)   # (tT, N)
    big = jnp.float32(3.0e38)                                    # finite sentinel
    cur = d2
    d2_cols = []
    idx_cols = []
    for _ in range(k):
        mn = jnp.min(cur, axis=1, keepdims=True)                           # (tT, 1)
        arg = jnp.min(jnp.where(cur == mn, col_ids, jnp.int32(N)),
                      axis=1, keepdims=True)                               # (tT, 1)
        d2_cols.append(mn)
        idx_cols.append(arg)
        cur = jnp.where(col_ids == arg, big, cur)
    # TODO(synk): for K >> 4, switch to a running top-K merge over streamed N
    # chunks (bounds VMEM independently of N and overlaps DMA with selection).

    d2_k = jnp.concatenate(d2_cols, axis=1)     # (tT, K)
    idx_k = jnp.concatenate(idx_cols, axis=1)   # (tT, K)

    # sqrt only on the selected (tT, K) values; max(sqrt(d2), eps) reproduces
    # the reference's  distances[d < eps] = eps  clamp for non-negative d.
    d_k = jnp.maximum(jnp.sqrt(d2_k), jnp.float32(epsilon))
    w = 1.0 / d_k
    w = w / jnp.sum(w, axis=1, keepdims=True)

    idx_ref[0] = idx_k
    w_ref[0] = w


def _pick_t_tile(T, N):
    """Largest T tile (multiple of 8) keeping ~3 live (tT, N) f32 tiles small."""
    if T <= 512:
        return T
    budget = 12 * 1024 * 1024   # bytes; fits comfortably under every gen's scoped VMEM
    for tT in (512, 256, 128, 64, 32, 16, 8):
        if 3 * tT * N * 4 <= budget:
            return tT
    return 8


def interpolating_forward(x_unsampled, x_sampled, nb_interpolating_points,
                          epsilon=1e-10):
    """Pallas equivalent of Interpolating.forward.

    x_unsampled: (B, T, D) float32
    x_sampled:   (B, N, D) float32
    returns (indexes (B,T,K) int32, weights (B,T,K,1) float32)
    """
    B, T, D = x_unsampled.shape
    _, N, _ = x_sampled.shape
    k = min(nb_interpolating_points, N)
    if N == 1:
        # TODO(synk): num_points == 1 branch of forward returns (T, None);
        # handled outside the kernel (no compute needed).
        return T, None

    tT = _pick_t_tile(T, N)
    num_t_tiles = pl.cdiv(T, tT)

    # Layout plumbing (outside the kernel): sampled points as (B, D, N) so the
    # resident block is lane-dense on N.
    xs_t = jnp.transpose(x_sampled, (0, 2, 1))

    kernel = functools.partial(_interpolating_kernel, k=k, epsilon=epsilon)

    cost = pl.CostEstimate(
        flops=int(B * T * N * (3 * D + 5 * k)),
        transcendentals=int(B * T * k),
        bytes_accessed=int(4 * (B * T * D + B * N * D + 2 * B * T * k)),
    )

    idx, w = pl.pallas_call(
        kernel,
        out_shape=(
            jax.ShapeDtypeStruct((B, T, k), jnp.int32),
            jax.ShapeDtypeStruct((B, T, k), jnp.float32),
        ),
        grid_spec=pltpu.PrefetchScalarGridSpec(
            num_scalar_prefetch=0,
            grid=(B, num_t_tiles),
            in_specs=[
                # query points: tiled along T (sublane axis; tT multiple of 8 or == T)
                pl.BlockSpec((1, tT, D), lambda b, t: (b, t, 0)),
                # sampled points: resident across the T-tile axis, lane-dense on N
                pl.BlockSpec((1, D, N), lambda b, t: (b, 0, 0)),
            ],
            out_specs=[
                pl.BlockSpec((1, tT, k), lambda b, t: (b, t, 0)),
                pl.BlockSpec((1, tT, k), lambda b, t: (b, t, 0)),
            ],
        ),
        compiler_params=pltpu.CompilerParams(
            dimension_semantics=("parallel", "parallel"),
            vmem_limit_bytes=28 * 1024 * 1024,   # raise v5e's 16 MiB default; safe on v6e/v7x
        ),
        cost_estimate=cost,
    )(x_unsampled, xs_t)

    # weights.unsqueeze(3) in the reference
    return idx, w[..., None]


def _reference(x_unsampled, x_sampled, k, epsilon=1e-10):
    # Pure-JAX reference mirroring the PyTorch code, for validation only.
    t1 = jnp.sum(x_unsampled ** 2, axis=2, keepdims=True)
    t2 = jnp.sum(x_sampled ** 2, axis=2, keepdims=True).transpose(0, 2, 1)
    t3 = jnp.matmul(x_unsampled, x_sampled.transpose(0, 2, 1))
    d = jnp.sqrt(jnp.maximum(t1 + t2 - 2 * t3, 0.0))
    order = jnp.argsort(d, axis=2)[:, :, :k]
    dk = jnp.take_along_axis(d, order, axis=2)
    dk = jnp.where(dk < epsilon, epsilon, dk)
    w = 1.0 / dk
    w = w / jnp.sum(w, axis=2, keepdims=True)
    return order, w[..., None]


if __name__ == "__main__":
    key = jax.random.PRNGKey(0)
    B, T, N, D = 2, 8, 16, 3
    K = 3
    EPS = 1e-10

    # Module __init__ params (batch_tensor is unused in forward; kept for fidelity).
    batch_tensor = jnp.arange(B, dtype=jnp.int32)
    del batch_tensor

    ku, ks = jax.random.split(key)
    x_unsampled = jax.random.normal(ku, (B, T, D), dtype=jnp.float32)
    x_sampled = jax.random.normal(ks, (B, N, D), dtype=jnp.float32)

    idx, w = interpolating_forward(x_unsampled, x_sampled, K, EPS)
    jax.block_until_ready((idx, w))

    idx_ref, w_ref = _reference(x_unsampled, x_sampled, K, EPS)
    np.testing.assert_array_equal(np.asarray(idx), np.asarray(idx_ref))
    np.testing.assert_allclose(np.asarray(w), np.asarray(w_ref),
                               rtol=1e-5, atol=1e-6)

    print("KERNEL_OK")
</pallas_src>

<mosaic_0001>
module attributes {stable_mosaic.version = 11 : i64} {
  func.func @_interpolating_kernel(%arg0: i32, %arg1: i32, %arg2: memref<1x8x3xf32, #tpu.memory_space<vmem>>, %arg3: memref<1x3x16xf32, #tpu.memory_space<vmem>>, %arg4: memref<1x8x3xi32, #tpu.memory_space<vmem>>, %arg5: memref<1x8x3xf32, #tpu.memory_space<vmem>>) attributes {dimension_semantics = [#tpu.dimension_semantics<parallel>, #tpu.dimension_semantics<parallel>], iteration_bounds = array<i64: 2, 1>, scalar_prefetch = 0 : i64, scratch_operands = 0 : i64, tpu.core_type = #tpu.core_type<tc>, window_params = [{transform_indices = @transform_0, window_bounds = array<i64: 1, 8, 3>}, {transform_indices = @transform_1, window_bounds = array<i64: 1, 3, 16>}, {transform_indices = @transform_2, window_bounds = array<i64: 1, 8, 3>}, {transform_indices = @transform_3, window_bounds = array<i64: 1, 8, 3>}]} {
    %c0 = arith.constant 0 : index
    %c0_0 = arith.constant 0 : index
    %c0_1 = arith.constant 0 : index
    %0 = vector.load %arg2[%c0, %c0_0, %c0_1] : memref<1x8x3xf32, #tpu.memory_space<vmem>>, vector<1x8x3xf32>
    %1 = vector.shape_cast %0 : vector<1x8x3xf32> to vector<8x3xf32>
    %c0_2 = arith.constant 0 : index
    %c0_3 = arith.constant 0 : index
    %c0_4 = arith.constant 0 : index
    %2 = vector.load %arg3[%c0_2, %c0_3, %c0_4] : memref<1x3x16xf32, #tpu.memory_space<vmem>>, vector<1x3x16xf32>
    %3 = vector.shape_cast %2 : vector<1x3x16xf32> to vector<3x16xf32>
    %cst = arith.constant 0.000000e+00 : f32
    %4 = vector.broadcast %cst : f32 to vector<8x16xf32>
    %5 = vector.extract_strided_slice %1 {offsets = [0, 0], sizes = [8, 1], strides = [1, 1]} : vector<8x3xf32> to vector<8x1xf32>
    %6 = vector.extract_strided_slice %3 {offsets = [0, 0], sizes = [1, 16], strides = [1, 1]} : vector<3x16xf32> to vector<1x16xf32>
    %7 = vector.broadcast %5 : vector<8x1xf32> to vector<8x16xf32>
    %8 = vector.broadcast %6 : vector<1x16xf32> to vector<8x16xf32>
    %9 = arith.subf %7, %8 : vector<8x16xf32>
    %10 = arith.mulf %9, %9 : vector<8x16xf32>
    %11 = arith.addf %4, %10 : vector<8x16xf32>
    %12 = vector.extract_strided_slice %1 {offsets = [0, 1], sizes = [8, 1], strides = [1, 1]} : vector<8x3xf32> to vector<8x1xf32>
    %13 = vector.extract_strided_slice %3 {offsets = [1, 0], sizes = [1, 16], strides = [1, 1]} : vector<3x16xf32> to vector<1x16xf32>
    %14 = vector.broadcast %12 : vector<8x1xf32> to vector<8x16xf32>
    %15 = vector.broadcast %13 : vector<1x16xf32> to vector<8x16xf32>
    %16 = arith.subf %14, %15 : vector<8x16xf32>
    %17 = arith.mulf %16, %16 : vector<8x16xf32>
    %18 = arith.addf %11, %17 : vector<8x16xf32>
    %19 = vector.extract_strided_slice %1 {offsets = [0, 2], sizes = [8, 1], strides = [1, 1]} : vector<8x3xf32> to vector<8x1xf32>
    %20 = vector.extract_strided_slice %3 {offsets = [2, 0], sizes = [1, 16], strides = [1, 1]} : vector<3x16xf32> to vector<1x16xf32>
    %21 = vector.broadcast %19 : vector<8x1xf32> to vector<8x16xf32>
    %22 = vector.broadcast %20 : vector<1x16xf32> to vector<8x16xf32>
    %23 = arith.subf %21, %22 : vector<8x16xf32>
    %24 = arith.mulf %23, %23 : vector<8x16xf32>
    %25 = arith.addf %18, %24 : vector<8x16xf32>
    %26 = tpu.iota {dimensions = array<i32: 1>} : vector<8x16xi32>
    %cst_5 = arith.constant dense<0x7F800000> : vector<8xf32>
    %27 = vector.multi_reduction <minimumf>, %25, %cst_5 [1] : vector<8x16xf32> to vector<8xf32>
    %28 = vector.shape_cast %27 : vector<8xf32> to vector<8x1xf32>
    %29 = vector.broadcast %28 : vector<8x1xf32> to vector<8x16xf32>
    %30 = arith.cmpf oeq, %25, %29 : vector<8x16xf32>
    %c16_i32 = arith.constant 16 : i32
    %31 = vector.broadcast %c16_i32 : i32 to vector<8x16xi32>
    %32 = arith.select %30, %26, %31 : vector<8x16xi1>, vector<8x16xi32>
    %cst_6 = arith.constant dense<2147483647> : vector<8xi32>
    %33 = vector.multi_reduction <minsi>, %32, %cst_6 [1] : vector<8x16xi32> to vector<8xi32>
    %34 = vector.shape_cast %33 : vector<8xi32> to vector<8x1xi32>
    %35 = vector.broadcast %34 : vector<8x1xi32> to vector<8x16xi32>
    %36 = arith.cmpi eq, %26, %35 : vector<8x16xi32>
    %cst_7 = arith.constant 3.000000e+38 : f32
    %37 = vector.broadcast %cst_7 : f32 to vector<8x16xf32>
    %38 = arith.select %36, %37, %25 : vector<8x16xi1>, vector<8x16xf32>
    %cst_8 = arith.constant dense<0x7F800000> : vector<8xf32>
    %39 = vector.multi_reduction <minimumf>, %38, %cst_8 [1] : vector<8x16xf32> to vector<8xf32>
    %40 = vector.shape_cast %39 : vector<8xf32> to vector<8x1xf32>
    %41 = vector.broadcast %40 : vector<8x1xf32> to vector<8x16xf32>
    %42 = arith.cmpf oeq, %38, %41 : vector<8x16xf32>
    %c16_i32_9 = arith.constant 16 : i32
    %43 = vector.broadcast %c16_i32_9 : i32 to vector<8x16xi32>
    %44 = arith.select %42, %26, %43 : vector<8x16xi1>, vector<8x16xi32>
    %cst_10 = arith.constant dense<2147483647> : vector<8xi32>
    %45 = vector.multi_reduction <minsi>, %44, %cst_10 [1] : vector<8x16xi32> to vector<8xi32>
    %46 = vector.shape_cast %45 : vector<8xi32> to vector<8x1xi32>
    %47 = vector.broadcast %46 : vector<8x1xi32> to vector<8x16xi32>
    %48 = arith.cmpi eq, %26, %47 : vector<8x16xi32>
    %cst_11 = arith.constant 3.000000e+38 : f32
    %49 = vector.broadcast %cst_11 : f32 to vector<8x16xf32>
    %50 = arith.select %48, %49, %38 : vector<8x16xi1>, vector<8x16xf32>
    %cst_12 = arith.constant dense<0x7F800000> : vector<8xf32>
    %51 = vector.multi_reduction <minimumf>, %50, %cst_12 [1] : vector<8x16xf32> to vector<8xf32>
    %52 = vector.shape_cast %51 : vector<8xf32> to vector<8x1xf32>
    %53 = vector.broadcast %52 : vector<8x1xf32> to vector<8x16xf32>
    %54 = arith.cmpf oeq, %50, %53 : vector<8x16xf32>
    %c16_i32_13 = arith.constant 16 : i32
    %55 = vector.broadcast %c16_i32_13 : i32 to vector<8x16xi32>
    %56 = arith.select %54, %26, %55 : vector<8x16xi1>, vector<8x16xi32>
    %cst_14 = arith.constant dense<2147483647> : vector<8xi32>
    %57 = vector.multi_reduction <minsi>, %56, %cst_14 [1] : vector<8x16xi32> to vector<8xi32>
    %58 = vector.shape_cast %57 : vector<8xi32> to vector<8x1xi32>
    %59 = tpu.concatenate %28, %40, %52 in 1 : vector<8x1xf32>, vector<8x1xf32>, vector<8x1xf32> -> vector<8x3xf32>
    %60 = tpu.concatenate %34, %46, %58 in 1 : vector<8x1xi32>, vector<8x1xi32>, vector<8x1xi32> -> vector<8x3xi32>
    %61 = math.sqrt %59 : vector<8x3xf32>
    %cst_15 = arith.constant 1.000000e-10 : f32
    %62 = vector.broadcast %cst_15 : f32 to vector<8x3xf32>
    %63 = arith.maximumf %61, %62 : vector<8x3xf32>
    %cst_16 = arith.constant 1.000000e+00 : f32
    %64 = vector.broadcast %cst_16 : f32 to vector<8x3xf32>
    %65 = arith.divf %64, %63 : vector<8x3xf32>
    %cst_17 = arith.constant dense<0.000000e+00> : vector<8xf32>
    %66 = vector.multi_reduction <add>, %65, %cst_17 [1] : vector<8x3xf32> to vector<8xf32>
    %67 = vector.shape_cast %66 : vector<8xf32> to vector<8x1xf32>
    %68 = vector.broadcast %67 : vector<8x1xf32> to vector<8x3xf32>
    %69 = arith.divf %65, %68 : vector<8x3xf32>
    %c0_18 = arith.constant 0 : index
    %c0_19 = arith.constant 0 : index
    %c0_20 = arith.constant 0 : index
    %70 = vector.load %arg4[%c0_18, %c0_19, %c0_20] : memref<1x8x3xi32, #tpu.memory_space<vmem>>, vector<1x8x3xi32>
    %71 = vector.shape_cast %70 : vector<1x8x3xi32> to vector<8x3xi32>
    %72 = vector.shape_cast %60 : vector<8x3xi32> to vector<1x8x3xi32>
    tpu.vector_store %arg4[%c0_18, %c0_19, %c0_20], %72 {strides = array<i32>} : memref<1x8x3xi32, #tpu.memory_space<vmem>>, vector<1x8x3xi32>,
    %c0_21 = arith.constant 0 : index
    %c0_22 = arith.constant 0 : index
    %c0_23 = arith.constant 0 : index
    %73 = vector.load %arg5[%c0_21, %c0_22, %c0_23] : memref<1x8x3xf32, #tpu.memory_space<vmem>>, vector<1x8x3xf32>
    %74 = vector.shape_cast %73 : vector<1x8x3xf32> to vector<8x3xf32>
    %75 = vector.shape_cast %69 : vector<8x3xf32> to vector<1x8x3xf32>
    tpu.vector_store %arg5[%c0_21, %c0_22, %c0_23], %75 {strides = array<i32>} : memref<1x8x3xf32, #tpu.memory_space<vmem>>, vector<1x8x3xf32>,
    return
  }
  func.func @transform_0(%arg0: i32, %arg1: i32) -> (i32, i32, i32) {
    %c0_i32 = arith.constant 0 : i32
    %c0_i32_0 = arith.constant 0 : i32
    return %arg0, %arg1, %c0_i32 : i32, i32, i32
  }
  func.func @transform_1(%arg0: i32, %arg1: i32) -> (i32, i32, i32) {
    %c0_i32 = arith.constant 0 : i32
    %c0_i32_0 = arith.constant 0 : i32
    %c0_i32_1 = arith.constant 0 : i32
    return %arg0, %c0_i32, %c0_i32_0 : i32, i32, i32
  }
  func.func @transform_2(%arg0: i32, %arg1: i32) -> (i32, i32, i32) {
    %c0_i32 = arith.constant 0 : i32
    %c0_i32_0 = arith.constant 0 : i32
    return %arg0, %arg1, %c0_i32 : i32, i32, i32
  }
  func.func @transform_3(%arg0: i32, %arg1: i32) -> (i32, i32, i32) {
    %c0_i32 = arith.constant 0 : i32
    %c0_i32_0 = arith.constant 0 : i32
    return %arg0, %arg1, %c0_i32 : i32, i32, i32
  }
}

</mosaic_0001>

<bundles_post_ra>
// kernel: tpu_custom_call.1
= control target key start
LH: loop header
LB: loop body
LE: loop exit
PB: predicated region body
PF: predicated region fallthrough
CT: control target
= control target key end

     0   :  { %s604_s12 = smov 0   ;;  %s606_s13 = smov 0   ;;  %s669_s0 = inlined_call_operand.vmem [shape: f32[2,8,3], index: 0, kind: input, shape index: {}]   ;;  %s670_s1 = inlined_call_operand.vmem [shape: f32[2,3,16], index: 1, kind: input, shape index: {}]   ;;  %s671_s2 = inlined_call_operand.vmem [shape: s32[2,8,3], index: 2, kind: output, shape index: {0}]   ;;  %s672_s3 = inlined_call_operand.vmem [shape: f32[2,8,3], index: 3, kind: output, shape index: {1}]  }
   0x1   :  { %s608_s14 = smov 0  }
   0x2 LB: > { %s26_s15 = sadd.s32 1, %s575_s13  ;;  %p513_p0 = scmp.ge.s32.totalorder %s579_s14, 1  ;;  %s579_s14 = sphi %s608_s14, %s14_s14   ;;  %s575_s13 = sphi %s606_s13, %s674_s13   ;;  %s571_s12 = sphi %s604_s12, %s673_s12  }
   0x3   : > { %p28_p1 = scmp.ge.s32.totalorder %s26_s15, 2  ;;  %p169_p2 = scmp.lt.s32.totalorder %s579_s14, 3 }
   0x5   : > { %s676_s15 = smov (%p28_p1, %s26_s15), 0  ;;  %p170_p3 = pnand %p513_p0, %p169_p2 }
   0x6   : > { %p208_p4 = scmp.lt.s32.totalorder (!%p170_p3), %s571_s12, 1 }
   0x7   : > { %173 = sbr.rel (%p170_p3) target bundleno = 1240 (0x4d8), region = 28 }
   0xc   : > { %v581_v0 = vmov 0   ;;  %v582_v1 = vmov 2   ;;  %s678_s12 = smov (!%p208_p4, %s571_s12), 1  ;;  %v583_v3 = vmov 1   ;;  %vm262_vm0 = vcmask 130048  }
   0xd   : > { %547 = vset.pattern.permute.xlu0 %v581_v0  ;;  %549 = vset.pattern.permute.xlu1 %v582_v1  ;;  %s622_s16 = sshll.u32 %s678_s12, 3  ;;  %s515_s20 = sshll.u32 %s678_s12, 2  ;;  %v260_v20 = vlaneseq  ;;  %vm327_vm7 = vcmask 7168   ;;  %vm329_vm8 = vcmask 15360   ;;  %vm361_vm15 = vcmask 23552  }
   0xe   : > { %s214_s19 = scalar_lea.vmem %s669_s0, %s622_s16  ;;  %s218_s23 = scalar_lea.vmem %s670_s1, %s515_s20 }
   0xf   : > { %v233_v2 = vld [vmem:[%s214_s19] sm:$0xff]  ;;  %v261_v21 = vand.u32 127, %v260_v20  ;;  %s232_s26 = scalar_lea.vmem %s672_s3, %s622_s16  ;;  %s225_s29 = scalar_lea.vmem %s671_s2, %s622_s16 }
  0x10   : > { %237 = vperm.xlu0 %547, %v233_v2   ;;  %253 = vperm.xlu1 %549, %v233_v2   ;;  %v234_v5 = vld [vmem:[%s218_s23] sm:$0x7] }
  0x11   : > { %v240_v6 = vperm.slane %v234_v5, 0  ;;  %v256_v7 = vperm.slane %v234_v5, 2  ;;  %v248_v9 = vperm.slane %v234_v5, 1 }
  0x18   : > { %548 = vset.pattern.permute.xlu0 %v583_v3 }
  0x19   : > { %245 = vperm.xlu0 %548, %v233_v2  }
  0x21   : > { %550 = vset.pattern.permute.xlu0 %v582_v1 }
  0x82   : > { %v238_v4 = vpop.permute.xlu0 %237  ;;  %v254_v8 = vpop.permute.xlu1 %253 }
  0x83   : > { %v241_v10 = vsub.f32 %v238_v4, %v240_v6  ;;  %v257_v11 = vsub.f32 %v254_v8, %v256_v7 }
  0x85   : > { %v242_v14 = vmul.f32 %v241_v10, %v241_v10  ;;  %v258_v16 = vmul.f32 %v257_v11, %v257_v11 }
  0x8b   : > { %v246_v12 = vpop.permute.xlu0 %245 }
  0x8c   : > { %v249_v13 = vsub.f32 %v246_v12, %v248_v9 }
  0x8e   : > { %v250_v15 = vmul.f32 %v249_v13, %v249_v13 }
  0x90   : > { %v251_v17 = vadd.f32 %v250_v15, %v242_v14 }
  0x92   : > { %v259_v18 = vadd.f32 %v258_v16, %v251_v17 }
  0x94   : > { %v263_v19 = vsel %vm262_vm0, %v259_v18, inf }
  0x95   : > { %264 = vmin.xlane.f32.xlu1 %v263_v19 }
 0x108   : > { %v265_v22 = vpop.xlane.xlu1 %264 }
 0x109   : > { %vm266_vm1 = vcmp.eq.f32.partialorder %v259_v18, %v265_v22 }
 0x10a   : > { %v267_v23 = vsel %vm266_vm1, %v261_v21, 16 }
 0x10b   : > { %v268_v24 = vsel %vm262_vm0, %v267_v23, 2147483647 }
 0x10c   : > { %v270_v25 = vshra.s32 %v268_v24, 16  ;;  %v269_v27 = vand.u32 65535, %v268_v24 }
 0x10e   : > { %v272_v26 = vcvt.s32.f32 %v270_v25  ;;  %v271_v29 = vcvt.s32.f32 %v269_v27 }
 0x110   : > { %273 = vmin.xlane.f32.xlu2 %v272_v26 }
 0x183   : > { %v274_v28 = vpop.xlane.xlu2 %273 }
 0x184   : > { %vm275_vm2 = vcmp.eq.f32.partialorder %v272_v26, %v274_v28  ;;  %v280_v31 = vcvt.f32.s32 %v274_v28 }
 0x185   : > { %v276_v30 = vsel %vm275_vm2, %v271_v29, inf }
 0x186   : > { %277 = vmin.xlane.f32.xlu2 %v276_v30  ;;  %v281_v33 = vshll.u32 %v280_v31, 16 }
 0x1f9   : > { %v278_v32 = vpop.xlane.xlu2 %277 }
 0x1fa   : > { %v279_v34 = vcvt.f32.s32 %v278_v32 }
 0x1fc   : > { %v633_v35 = vadd.s32 %v281_v33, %v279_v34 }
 0x1fe   : > { %vm283_vm3 = vcmp.eq.s32.totalorder %v261_v21, %v633_v35 }
 0x1ff   : > { %v284_v36 = vsel %vm283_vm3, 3e+38, %v259_v18 }
 0x200   : > { %v285_v37 = vsel %vm262_vm0, %v284_v36, inf }
 0x201   : > { %286 = vmin.xlane.f32.xlu2 %v285_v37 }
 0x274   : > { %v287_v38 = vpop.xlane.xlu2 %286 }
 0x275   : > { %vm288_vm4 = vcmp.eq.f32.partialorder %v284_v36, %v287_v38  ;;  %v328_v54 = vsel %vm327_vm7, %v265_v22, %v287_v38 }
 0x276   : > { %v289_v39 = vsel %vm288_vm4, %v261_v21, 16 }
 0x277   : > { %v290_v40 = vsel %vm262_vm0, %v289_v39, 2147483647 }
 0x278   : > { %v292_v41 = vshra.s32 %v290_v40, 16  ;;  %v291_v43 = vand.u32 65535, %v290_v40 }
 0x27a   : > { %v294_v42 = vcvt.s32.f32 %v292_v41  ;;  %v293_v45 = vcvt.s32.f32 %v291_v43 }
 0x27c   : > { %295 = vmin.xlane.f32.xlu0 %v294_v42 }
 0x2ef   : > { %v296_v44 = vpop.xlane.xlu0 %295 }
 0x2f0   : > { %vm297_vm5 = vcmp.eq.f32.partialorder %v294_v42, %v296_v44  ;;  %v302_v47 = vcvt.f32.s32 %v296_v44 }
 0x2f1   : > { %v298_v46 = vsel %vm297_vm5, %v293_v45, inf }
 0x2f2   : > { %299 = vmin.xlane.f32.xlu2 %v298_v46  ;;  %v303_v49 = vshll.u32 %v302_v47, 16 }
 0x365   : > { %v300_v48 = vpop.xlane.xlu2 %299 }
 0x366   : > { %v301_v50 = vcvt.f32.s32 %v300_v48 }
 0x368   : > { %v638_v51 = vadd.s32 %v303_v49, %v301_v50 }
 0x36a   : > { %vm305_vm6 = vcmp.eq.s32.totalorder %v261_v21, %v638_v51  ;;  %v331_v41 = vsel %vm327_vm7, %v633_v35, %v638_v51 }
 0x36b   : > { %v306_v52 = vsel %vm305_vm6, 3e+38, %v284_v36 }
 0x36c   : > { %v307_v53 = vsel %vm262_vm0, %v306_v52, inf }
 0x36d   : > { %308 = vmin.xlane.f32.xlu2 %v307_v53 }
 0x3e0   : > { %v309_v55 = vpop.xlane.xlu2 %308 }
 0x3e1   : > { %vm310_vm9 = vcmp.eq.f32.partialorder %v306_v52, %v309_v55  ;;  %v330_v56 = vsel %vm329_vm8, %v328_v54, %v309_v55 }
 0x3e2   : > { %v311_v57 = vsel %vm310_vm9, %v261_v21, 16  ;;  %551 = vrsqrt.f32 %v330_v56  ;;  %vm340_vm10 = vcmp.eq.f32.partialorder %v330_v56, inf  ;;  %v343_v4 = vand.u32 2147483648, %v330_v56 }
 0x3e3   : > { %v312_v58 = vsel %vm262_vm0, %v311_v57, 2147483647  ;;  %vm342_vm11 = vcmp.eq.f32.partialorder %v330_v56, 0.0 }
 0x3e4   : > { %v314_v59 = vshra.s32 %v312_v58, 16  ;;  %v313_v19 = vand.u32 65535, %v312_v58 }
 0x3e6   : > { %v316_v60 = vcvt.s32.f32 %v314_v59  ;;  %v315_v21 = vcvt.s32.f32 %v313_v19 }
 0x3e8   : > { %v552_v61 = vpop.eup %551  ;;  %317 = vmin.xlane.f32.xlu2 %v316_v60 }
 0x3e9   : > { %v334_v62 = vmul.f32 %v552_v61, %v330_v56 }
 0x3eb   : > { %v335_v63 = vmul.f32 %v552_v61, %v334_v62 }
 0x3ed   : > { %v336_v0 = vmul.f32 0.5, %v335_v63 }
 0x3ef   : > { %v337_v1 = vsub.f32 1.5, %v336_v0 }
 0x3f1   : > { %v338_v2 = vmul.f32 %v552_v61, %v337_v1 }
 0x3f3   : > { %v339_v3 = vmul.f32 %v338_v2, %v330_v56 }
 0x3f5   : > { %v341_v5 = vsel %vm340_vm10, %v330_v56, %v339_v3 }
 0x3f6   : > { %v344_v6 = vsel %vm342_vm11, %v343_v4, %v341_v5 }
 0x3f7   : > { %v345_v7 = vmax.f32 %v344_v6, 1e-10 }
 0x3f9   : > { %553 = vrcp.f32 %v345_v7  ;;  %v357_v11 = vand.u32 2147483648, %v345_v7  ;;  %v355_v13 = vand.u32 2147483647, %v345_v7  ;;  %vm351_vm13 = vweird.f32 %v345_v7 }
 0x3fb   : > { %v358_v15 = vor.u32 1.1754944e-38, %v357_v11  ;;  %vm356_vm0 = vcmp.eq.f32.partialorder %v355_v13, 8.507059e+37 }
 0x3ff   : > { %v554_v8 = vpop.eup %553 }
 0x400   : > { %v347_v9 = vmul.f32 %v554_v8, %v345_v7  ;;  %vm352_vm12 = vweird.f32 %v554_v8 }
 0x401   : > { %vm353_vm14 = vmor %vm351_vm13, %vm352_vm12 }
 0x402   : > { %v348_v10 = vsub.f32 1.0, %v347_v9 }
 0x404   : > { %v349_v12 = vmul.f32 %v554_v8, %v348_v10 }
 0x406   : > { %v350_v14 = vadd.f32 %v554_v8, %v349_v12 }
 0x408   : > { %v354_v16 = vsel %vm353_vm14, %v554_v8, %v350_v14 }
 0x409   : > { %v359_v17 = vsel %vm356_vm0, %v358_v15, %v354_v16 }
 0x40a   : > { %v362_v18 = vsel %vm361_vm15, %v359_v17, 0.0 }
 0x40b   : > { %363 = vadd.xlane.f32.xlu2 %v362_v18 }
 0x45b   : > { %v318_v20 = vpop.xlane.xlu2 %317 }
 0x45c   : > { %vm319_vm1 = vcmp.eq.f32.partialorder %v316_v60, %v318_v20  ;;  %v324_v36 = vcvt.f32.s32 %v318_v20 }
 0x45d   : > { %v320_v22 = vsel %vm319_vm1, %v315_v21, inf }
 0x45e   : > { %321 = vmin.xlane.f32.xlu1 %v320_v22  ;;  %v325_v38 = vshll.u32 %v324_v36, 16 }
 0x47e   : > { %v364_v23 = vpop.xlane.xlu2 %363 }
 0x47f   : > { %555 = vrcp.f32 %v364_v23  ;;  %v376_v27 = vand.u32 2147483648, %v364_v23  ;;  %v374_v29 = vand.u32 2147483647, %v364_v23  ;;  %vm370_vm3 = vweird.f32 %v364_v23 }
 0x481   : > { %v377_v31 = vor.u32 1.1754944e-38, %v376_v27  ;;  %vm375_vm5 = vcmp.eq.f32.partialorder %v374_v29, 8.507059e+37 }
 0x485   : > { %v556_v24 = vpop.eup %555 }
 0x486   : > { %v366_v25 = vmul.f32 %v556_v24, %v364_v23  ;;  %vm371_vm2 = vweird.f32 %v556_v24 }
 0x487   : > { %vm372_vm4 = vmor %vm370_vm3, %vm371_vm2 }
 0x488   : > { %v367_v26 = vsub.f32 1.0, %v366_v25 }
 0x48a   : > { %v368_v28 = vmul.f32 %v556_v24, %v367_v26 }
 0x48c   : > { %v369_v30 = vadd.f32 %v556_v24, %v368_v28 }
 0x48e   : > { %v373_v32 = vsel %vm372_vm4, %v556_v24, %v369_v30 }
 0x48f   : > { %v378_v33 = vsel %vm375_vm5, %v377_v31, %v373_v32 }
 0x490   : > { %v379_v34 = vmul.f32 %v378_v33, %v359_v17 }
 0x492   : > { %381 = vst.msk [vmem:[%s232_s26] sm:$0xff] %vm361_vm15, %v379_v34 }
 0x4d1   : > { %v322_v37 = vpop.xlane.xlu1 %321 }
 0x4d2   : > { %v323_v39 = vcvt.f32.s32 %v322_v37 }
 0x4d4   : > { %v326_v40 = vadd.s32 %v325_v38, %v323_v39 }
 0x4d6   : > { %v332_v42 = vsel %vm329_vm8, %v331_v41, %v326_v40 }
 0x4d7   : > { %380 = vst.msk [vmem:[%s225_s29] sm:$0xff] %vm361_vm15, %v332_v42 }
 0x4d8 PF: > { %s14_s14 = sadd.s32 1, %s579_s14   ;;  %s673_s12 = smov %s575_s13 }
 0x4d9   : > { %p11_p5 = scmp.ge.s32.totalorder %s14_s14, 4   ;;  %s674_s13 = smov %s676_s15 }
 0x4db   :  { %13 = sbr.rel (!%p11_p5) target bundleno = 2 (0x2), region = 73 }

</bundles_post_ra>
